<compile_context>
chip_gen: v6e
topology: v6e:2x2x1
jax: 0.10.0
libtpu: 0.0.40
codegen_flags: <defaults>
</compile_context>

<pallas_src>
import jax
import jax.numpy as jnp
from jax.experimental import pallas as pl
from jax.experimental.pallas import tpu as pltpu


def _round_up(v, m):
    return (v + m - 1) // m * m


def _chip_generation():
    try:
        kind = jax.devices()[0].device_kind.lower()
    except Exception:
        return "unknown"
    if "v5 lite" in kind or "v5e" in kind or "v5lite" in kind:
        return "v5e"
    if "v6" in kind:
        return "v6e"
    if "v7" in kind:
        return "v7x"
    return "unknown"


# generation -> (block VMEM budget, min grid steps to keep, scoped-VMEM cap)
_GEN_TABLE = {
    "v5e": (12 << 20, 1, 56 << 20),   # 16 MiB scoped default, 128 MiB physical
    "v6e": (24 << 20, 1, 64 << 20),   # 32 MiB scoped default, 128 MiB physical
    "v7x": (16 << 20, 2, 40 << 20),   # 32 MiB scoped default,  64 MiB physical / TC
}


def _pick_batch_block(N, C, Co, L, dtype, generation):
    """Largest divisor of N whose double-buffered in+out blocks fit the per-chip
    VMEM budget, keeping >= keep_parallel grid steps (only demanded on v7x).
    Returns (nb, vmem_limit_bytes_or_None)."""
    itemsize = jnp.dtype(dtype).itemsize
    sublane = max(8, 32 // itemsize)          # 8 (f32) / 16 (bf16) / 32 (int8)
    lane = _round_up(L, 128)
    per_n = 2 * (_round_up(C, sublane) + _round_up(Co, sublane)) * lane * itemsize
    budget, keep_parallel, cap = _GEN_TABLE.get(generation, (12 << 20, 2, 32 << 20))

    best = None
    for nb in range(1, N + 1):
        if N % nb:
            continue
        if nb * per_n > budget:
            continue
        if N >= keep_parallel and (N // nb) < keep_parallel:
            continue
        best = nb
    if best is None:
        # Even a single sample exceeds the budget: keep nb=1 and raise the scoped
        # limit instead of silently failing compilation.
        # TODO(synk): also block over C/Co if per_n ever exceeds the per-chip cap.
        best = 1

    needed = best * per_n + (1 << 20)          # headroom for pipeline bookkeeping
    if generation in _GEN_TABLE:
        vmem_limit = min(max(needed, budget + (1 << 20)), cap)
    else:
        # Unknown chip: only override the scoped default if we actually need more.
        vmem_limit = min(needed, cap) if needed > (14 << 20) else None
    return best, vmem_limit


def _make_kernel(pad, num_channels):
    def lambda_shortcut_kernel(x_ref, o_ref):
        # x_ref : (nb, C, L)           -- already decimated, lane-dense (L = Ho*Wo)
        # o_ref : (nb, C + 2*pad, L)
        # Payload channels written exactly once; zeros only on the pad slabs.
        o_ref[:, pad:pad + num_channels, :] = x_ref[...]
        if pad:
            nb = x_ref.shape[0]
            L = x_ref.shape[2]
            z = jnp.zeros((nb, pad, L), o_ref.dtype)
            o_ref[:, :pad, :] = z
            o_ref[:, pad + num_channels:, :] = z
    return lambda_shortcut_kernel


def lambda_layer(x, planes):
    """Pallas equivalent of
       LambdaLayer(lambda x: F.pad(x[:, :, ::2, ::2],
                                   (0,0,0,0, planes//4, planes//4), 'constant', 0))."""
    N, C, H, W = x.shape
    pad = planes // 4
    Co = C + 2 * pad
    Ho, Wo = (H + 1) // 2, (W + 1) // 2
    L = Ho * Wo

    # Both spatial decimations at the XLA level; merging the contiguous trailing
    # (Ho, Wo) dims of the row-major result into one lane-dense axis is free.
    x_d = x[:, :, ::2, ::2].reshape(N, C, L)

    generation = _chip_generation()
    nb, vmem_limit = _pick_batch_block(N, C, Co, L, x.dtype, generation)
    grid = (N // nb,)

    y = pl.pallas_call(
        _make_kernel(pad, C),
        out_shape=jax.ShapeDtypeStruct((N, Co, L), x.dtype),
        grid_spec=pltpu.PrefetchScalarGridSpec(
            num_scalar_prefetch=0,
            grid=grid,
            in_specs=[pl.BlockSpec((nb, C, L), lambda n: (n, 0, 0))],
            out_specs=pl.BlockSpec((nb, Co, L), lambda n: (n, 0, 0)),
        ),
        compiler_params=pltpu.CompilerParams(
            dimension_semantics=("parallel",),
            allow_input_fusion=[True],   # let XLA fuse the slice+reshape producer
            vmem_limit_bytes=vmem_limit,
        ),
    )(x_d)

    # Free reshape back to NCHW (contiguous trailing dims).
    return y.reshape(N, Co, Ho, Wo)


if __name__ == "__main__":
    key = jax.random.PRNGKey(0)
    # Small shapes consistent with the ResNet shortcut: in_planes=4 -> planes=8.
    N, C, H, W = 2, 4, 16, 16
    planes = 2 * C
    x = jax.random.normal(key, (N, C, H, W), dtype=jnp.float32)

    fn = jax.jit(lambda_layer, static_argnames="planes")
    y = jax.block_until_ready(fn(x, planes))

    # Pure-JAX reference of the PyTorch lambda.
    pad = planes // 4
    ref = jnp.pad(x[:, :, ::2, ::2],
                  ((0, 0), (pad, pad), (0, 0), (0, 0)),
                  mode="constant", constant_values=0.0)

    assert y.shape == ref.shape, (y.shape, ref.shape)
    assert jnp.allclose(y, ref, atol=0.0), "mismatch vs reference"
    print("KERNEL_OK")
</pallas_src>

<mosaic_0001>
module attributes {stable_mosaic.version = 11 : i64} {
  func.func @lambda_shortcut_kernel(%arg0: i32, %arg1: memref<1x4x64xf32, #tpu.memory_space<vmem>>, %arg2: memref<1x8x64xf32, #tpu.memory_space<vmem>>) attributes {dimension_semantics = [#tpu.dimension_semantics<parallel>], iteration_bounds = array<i64: 2>, scalar_prefetch = 0 : i64, scratch_operands = 0 : i64, tpu.core_type = #tpu.core_type<tc>, window_params = [{transform_indices = @transform_0, window_bounds = array<i64: 1, 4, 64>}, {transform_indices = @transform_1, window_bounds = array<i64: 1, 8, 64>}]} {
    %c0 = arith.constant 0 : index
    %c0_0 = arith.constant 0 : index
    %c0_1 = arith.constant 0 : index
    %0 = vector.load %arg1[%c0, %c0_0, %c0_1] : memref<1x4x64xf32, #tpu.memory_space<vmem>>, vector<1x4x64xf32>
    %c0_2 = arith.constant 0 : index
    %c2 = arith.constant 2 : index
    %c0_3 = arith.constant 0 : index
    %1 = vector.load %arg2[%c0_2, %c2, %c0_3] : memref<1x8x64xf32, #tpu.memory_space<vmem>>, vector<1x4x64xf32>
    tpu.vector_store %arg2[%c0_2, %c2, %c0_3], %0 {strides = array<i32>} : memref<1x8x64xf32, #tpu.memory_space<vmem>>, vector<1x4x64xf32>,
    %cst = arith.constant 0.000000e+00 : f32
    %2 = vector.broadcast %cst : f32 to vector<1x2x64xf32>
    %c0_4 = arith.constant 0 : index
    %c0_5 = arith.constant 0 : index
    %c0_6 = arith.constant 0 : index
    %3 = vector.load %arg2[%c0_4, %c0_5, %c0_6] : memref<1x8x64xf32, #tpu.memory_space<vmem>>, vector<1x2x64xf32>
    tpu.vector_store %arg2[%c0_4, %c0_5, %c0_6], %2 {strides = array<i32>} : memref<1x8x64xf32, #tpu.memory_space<vmem>>, vector<1x2x64xf32>,
    %c0_7 = arith.constant 0 : index
    %c6 = arith.constant 6 : index
    %c0_8 = arith.constant 0 : index
    %4 = vector.load %arg2[%c0_7, %c6, %c0_8] : memref<1x8x64xf32, #tpu.memory_space<vmem>>, vector<1x2x64xf32>
    tpu.vector_store %arg2[%c0_7, %c6, %c0_8], %2 {strides = array<i32>} : memref<1x8x64xf32, #tpu.memory_space<vmem>>, vector<1x2x64xf32>,
    return
  }
  func.func @transform_0(%arg0: i32) -> (i32, i32, i32) {
    %c0_i32 = arith.constant 0 : i32
    %c0_i32_0 = arith.constant 0 : i32
    %c0_i32_1 = arith.constant 0 : i32
    return %arg0, %c0_i32, %c0_i32_0 : i32, i32, i32
  }
  func.func @transform_1(%arg0: i32) -> (i32, i32, i32) {
    %c0_i32 = arith.constant 0 : i32
    %c0_i32_0 = arith.constant 0 : i32
    %c0_i32_1 = arith.constant 0 : i32
    return %arg0, %c0_i32, %c0_i32_0 : i32, i32, i32
  }
}

</mosaic_0001>

<bundles_post_ra>
// kernel: lambda_layer.1
= control target key start
LH: loop header
LB: loop body
LE: loop exit
PB: predicated region body
PF: predicated region fallthrough
CT: control target
= control target key end

     0   :  { %s193_s6 = smov 0   ;;  %s214_s0 = inlined_call_operand.vmem [shape: f32[2,4,64], index: 0, kind: input, shape index: {}]   ;;  %s215_s1 = inlined_call_operand.vmem [shape: f32[2,8,64], index: 1, kind: output, shape index: {}]  }
   0x1 LB: > { %s171_s7 = sadd.s32 4294967295, %s195_s6   ;;  %p175_p0 = scmp.ge.s32.totalorder %s195_s6, 1  ;;  %s195_s6 = sphi %s193_s6, %s11_s6  }
   0x2   : > { %p86_p1 = scmp.lt.s32.totalorder %s195_s6, 3 }
   0x4   : > { %p87_p2 = pnand %p175_p0, %p86_p1 }
   0x5   : > { %p104_p3 = scmp.lt.s32.totalorder (!%p87_p2), %s171_s7, 1 }
   0x6   : > { %90 = sbr.rel (%p87_p2) target bundleno = 16 (0x10), region = 24 }
   0xb   : > { %s217_s7 = smov (!%p104_p3, %s171_s7), 1  ;;  %vm115_vm0 = vcmask 517120   ;;  %vm113_vm1 = vcmask 519168   ;;  %v197_v1 = vmov 0.0  }
   0xc   : > { %s176_s8 = sshll.u32 %s217_s7, 2  ;;  %s177_s9 = sshll.u32 %s217_s7, 3 }
   0xd   : > { %s107_s12 = scalar_lea.vmem %s214_s0, %s176_s8  ;;  %s111_s15 = scalar_lea.vmem %s215_s1, %s177_s9 }
   0xe   : > { %v112_v0 = vld [vmem:[%s107_s12] sm:$0xf]  ;;  %116 = vst.msk [vmem:[%s111_s15] sm:$0x3] %vm115_vm0, %v197_v1  ;;  %117 = vst.msk [vmem:[%s111_s15 + $0x6] sm:$0x3] %vm115_vm0, %v197_v1 }
   0xf   : > { %114 = vst.msk [vmem:[%s111_s15 + $0x2] sm:$0xf] %vm113_vm1, %v112_v0 }
  0x10 PF: > { %s11_s6 = sadd.s32 1, %s195_s6  }
  0x11   : > { %p8_p4 = scmp.ge.s32.totalorder %s11_s6, 4  }
  0x13   :  { %10 = sbr.rel (!%p8_p4) target bundleno = 1 (0x1), region = 54 }

</bundles_post_ra>
